<compile_context>
chip_gen: v5e
topology: v5e:2x2
jax: 0.10.0
libtpu: 0.0.40
codegen_flags: <defaults>
</compile_context>

<pallas_src>
import jax
import jax.numpy as jnp
from jax.experimental import pallas as pl
from jax.experimental.pallas import tpu as pltpu

input_size = 1
hidden_size = 16
output_size = 1


def agent_kernel(w1_ref, b1_ref, w2_ref, b2_ref, x_ref, o_ref):
    """x_ref/o_ref: (block_rows, lanes) f32 tiles; params are SMEM scalars.

    Computes, elementwise over the lane-dense batch tile:
        y = b2 + sum_k relu(x * w1[k] + b1[k]) * w2[k]
    entirely on the VPU (scalar-broadcast ops) -- no MXU / XLU traffic.
    """
    x = x_ref[...]
    # Start the accumulator at b2 (broadcast) instead of zeros + trailing add.
    acc = jnp.full_like(x, b2_ref[0])
    n_hidden = w1_ref.shape[0]  # static (16) -> fully unrolled chain
    for k in range(n_hidden):
        h = jnp.maximum(x * w1_ref[k] + b1_ref[k], 0.0)
        acc = acc + h * w2_ref[k]
    o_ref[...] = acc.astype(o_ref.dtype)


def agent_forward(x, w1_t, b1, w2_t, b2):
    """x: (B, 1); w1_t: (1, hidden); b1: (hidden,); w2_t: (hidden, 1); b2: (1,)
    -> (B, 1).  Matches PyTorch Agent.forward (fc1 -> ReLU -> fc2)."""
    B = x.shape[0]
    assert x.shape == (B, input_size)

    # ---- lane-dense re-layout of the batch -------------------------------
    x_flat = x.reshape(-1).astype(jnp.float32)            # (B,) since input_size == 1
    lanes = 1024 if B >= 1024 else 128                     # last dim: multiple of 128
    rows_needed = -(-B // lanes)                           # cdiv
    block_rows = min(512, ((rows_needed + 7) // 8) * 8)    # second-last: multiple of 8
    num_blocks = -(-rows_needed // block_rows)
    total_rows = num_blocks * block_rows
    padded_len = total_rows * lanes

    x_pad = jnp.pad(x_flat, (0, padded_len - B))           # fuses with the reshape
    x2d = x_pad.reshape(total_rows, lanes)

    # ---- tiny parameters as flat SMEM scalars ----------------------------
    w1_s = w1_t.reshape(-1).astype(jnp.float32)  # (hidden,)
    b1_s = b1.reshape(-1).astype(jnp.float32)    # (hidden,)
    w2_s = w2_t.reshape(-1).astype(jnp.float32)  # (hidden,)
    b2_s = b2.reshape(-1).astype(jnp.float32)    # (output,)

    smem_spec = pl.BlockSpec(memory_space=pltpu.MemorySpace.SMEM)

    out2d = pl.pallas_call(
        agent_kernel,
        out_shape=jax.ShapeDtypeStruct((total_rows, lanes), jnp.float32),
        grid=(num_blocks,),
        in_specs=[
            smem_spec,  # w1
            smem_spec,  # b1
            smem_spec,  # w2
            smem_spec,  # b2
            pl.BlockSpec((block_rows, lanes), lambda i: (i, 0)),
        ],
        out_specs=pl.BlockSpec((block_rows, lanes), lambda i: (i, 0)),
        compiler_params=pltpu.CompilerParams(
            dimension_semantics=("parallel",),  # batch blocks across v7x's 2 TCs
        ),
        cost_estimate=pl.CostEstimate(
            flops=5 * hidden_size * padded_len,
            transcendentals=0,
            bytes_accessed=2 * 4 * padded_len,
        ),
    )(w1_s, b1_s, w2_s, b2_s, x2d)

    # Drop batch padding, restore (B, output_size).
    return out2d.reshape(-1)[:B].reshape(B, output_size)


def init_params(key):
    """Deterministic init mimicking nn.Linear's uniform(-1/sqrt(fan_in), 1/sqrt(fan_in))."""
    k1, k2, k3, k4 = jax.random.split(key, 4)
    bound1 = 1.0 / jnp.sqrt(jnp.float32(input_size))
    bound2 = 1.0 / jnp.sqrt(jnp.float32(hidden_size))
    # Weights stored already transposed: (in, out)
    w1_t = jax.random.uniform(k1, (input_size, hidden_size), jnp.float32, -bound1, bound1)
    b1 = jax.random.uniform(k2, (hidden_size,), jnp.float32, -bound1, bound1)
    w2_t = jax.random.uniform(k3, (hidden_size, output_size), jnp.float32, -bound2, bound2)
    b2 = jax.random.uniform(k4, (output_size,), jnp.float32, -bound2, bound2)
    return w1_t, b1, w2_t, b2


def _reference(x, w1_t, b1, w2_t, b2):
    return jnp.maximum(x @ w1_t + b1, 0.0) @ w2_t + b2


if __name__ == "__main__":
    key = jax.random.PRNGKey(0)
    k_x, k_x2, k_p = jax.random.split(key, 3)
    w1_t, b1, w2_t, b2 = init_params(k_p)

    # Small batch (matches the module's typical use).
    batch = 8
    x = jax.random.normal(k_x, (batch, input_size), jnp.float32)
    out = jax.block_until_ready(agent_forward(x, w1_t, b1, w2_t, b2))
    ref = _reference(x, w1_t, b1, w2_t, b2)
    assert out.shape == (batch, output_size)
    assert jnp.allclose(out, ref, atol=1e-5, rtol=1e-5)

    # Larger, non-multiple batch to exercise the lane-dense padding + slicing path.
    batch2 = 2050
    x2 = jax.random.normal(k_x2, (batch2, input_size), jnp.float32)
    out2 = jax.block_until_ready(agent_forward(x2, w1_t, b1, w2_t, b2))
    ref2 = _reference(x2, w1_t, b1, w2_t, b2)
    assert out2.shape == (batch2, output_size)
    assert jnp.allclose(out2, ref2, atol=1e-5, rtol=1e-5)

    print("KERNEL_OK")
</pallas_src>

<mosaic_0001>
module attributes {stable_mosaic.version = 11 : i64} {
  func.func @agent_kernel(%arg0: i32, %arg1: memref<16xf32, #tpu.memory_space<smem>>, %arg2: memref<16xf32, #tpu.memory_space<smem>>, %arg3: memref<16xf32, #tpu.memory_space<smem>>, %arg4: memref<1xf32, #tpu.memory_space<smem>>, %arg5: memref<8x128xf32, #tpu.memory_space<vmem>>, %arg6: memref<8x128xf32, #tpu.memory_space<vmem>>) attributes {dimension_semantics = [#tpu.dimension_semantics<parallel>], iteration_bounds = array<i64: 1>, scalar_prefetch = 0 : i64, scratch_operands = 0 : i64, tpu.core_type = #tpu.core_type<tc>, window_params = [{transform_indices = @transform_0, window_bounds = array<i64: 16>}, {transform_indices = @transform_1, window_bounds = array<i64: 16>}, {transform_indices = @transform_2, window_bounds = array<i64: 16>}, {transform_indices = @transform_3, window_bounds = array<i64: 1>}, {transform_indices = @transform_4, window_bounds = array<i64: 8, 128>}, {transform_indices = @transform_5, window_bounds = array<i64: 8, 128>}]} {
    %c0 = arith.constant 0 : index
    %c0_0 = arith.constant 0 : index
    %0 = vector.load %arg5[%c0, %c0_0] : memref<8x128xf32, #tpu.memory_space<vmem>>, vector<8x128xf32>
    %c0_1 = arith.constant 0 : index
    %1 = memref.load %arg4[%c0_1] : memref<1xf32, #tpu.memory_space<smem>>
    %2 = vector.broadcast %1 : f32 to vector<8x128xf32>
    %c0_2 = arith.constant 0 : index
    %3 = memref.load %arg1[%c0_2] : memref<16xf32, #tpu.memory_space<smem>>
    %4 = vector.broadcast %3 : f32 to vector<8x128xf32>
    %5 = arith.mulf %0, %4 : vector<8x128xf32>
    %c0_3 = arith.constant 0 : index
    %6 = memref.load %arg2[%c0_3] : memref<16xf32, #tpu.memory_space<smem>>
    %7 = vector.broadcast %6 : f32 to vector<8x128xf32>
    %8 = arith.addf %5, %7 : vector<8x128xf32>
    %cst = arith.constant 0.000000e+00 : f32
    %9 = vector.broadcast %cst : f32 to vector<8x128xf32>
    %10 = arith.maximumf %8, %9 : vector<8x128xf32>
    %c0_4 = arith.constant 0 : index
    %11 = memref.load %arg3[%c0_4] : memref<16xf32, #tpu.memory_space<smem>>
    %12 = vector.broadcast %11 : f32 to vector<8x128xf32>
    %13 = arith.mulf %10, %12 : vector<8x128xf32>
    %14 = arith.addf %2, %13 : vector<8x128xf32>
    %c1 = arith.constant 1 : index
    %15 = memref.load %arg1[%c1] : memref<16xf32, #tpu.memory_space<smem>>
    %16 = vector.broadcast %15 : f32 to vector<8x128xf32>
    %17 = arith.mulf %0, %16 : vector<8x128xf32>
    %c1_5 = arith.constant 1 : index
    %18 = memref.load %arg2[%c1_5] : memref<16xf32, #tpu.memory_space<smem>>
    %19 = vector.broadcast %18 : f32 to vector<8x128xf32>
    %20 = arith.addf %17, %19 : vector<8x128xf32>
    %cst_6 = arith.constant 0.000000e+00 : f32
    %21 = vector.broadcast %cst_6 : f32 to vector<8x128xf32>
    %22 = arith.maximumf %20, %21 : vector<8x128xf32>
    %c1_7 = arith.constant 1 : index
    %23 = memref.load %arg3[%c1_7] : memref<16xf32, #tpu.memory_space<smem>>
    %24 = vector.broadcast %23 : f32 to vector<8x128xf32>
    %25 = arith.mulf %22, %24 : vector<8x128xf32>
    %26 = arith.addf %14, %25 : vector<8x128xf32>
    %c2 = arith.constant 2 : index
    %27 = memref.load %arg1[%c2] : memref<16xf32, #tpu.memory_space<smem>>
    %28 = vector.broadcast %27 : f32 to vector<8x128xf32>
    %29 = arith.mulf %0, %28 : vector<8x128xf32>
    %c2_8 = arith.constant 2 : index
    %30 = memref.load %arg2[%c2_8] : memref<16xf32, #tpu.memory_space<smem>>
    %31 = vector.broadcast %30 : f32 to vector<8x128xf32>
    %32 = arith.addf %29, %31 : vector<8x128xf32>
    %cst_9 = arith.constant 0.000000e+00 : f32
    %33 = vector.broadcast %cst_9 : f32 to vector<8x128xf32>
    %34 = arith.maximumf %32, %33 : vector<8x128xf32>
    %c2_10 = arith.constant 2 : index
    %35 = memref.load %arg3[%c2_10] : memref<16xf32, #tpu.memory_space<smem>>
    %36 = vector.broadcast %35 : f32 to vector<8x128xf32>
    %37 = arith.mulf %34, %36 : vector<8x128xf32>
    %38 = arith.addf %26, %37 : vector<8x128xf32>
    %c3 = arith.constant 3 : index
    %39 = memref.load %arg1[%c3] : memref<16xf32, #tpu.memory_space<smem>>
    %40 = vector.broadcast %39 : f32 to vector<8x128xf32>
    %41 = arith.mulf %0, %40 : vector<8x128xf32>
    %c3_11 = arith.constant 3 : index
    %42 = memref.load %arg2[%c3_11] : memref<16xf32, #tpu.memory_space<smem>>
    %43 = vector.broadcast %42 : f32 to vector<8x128xf32>
    %44 = arith.addf %41, %43 : vector<8x128xf32>
    %cst_12 = arith.constant 0.000000e+00 : f32
    %45 = vector.broadcast %cst_12 : f32 to vector<8x128xf32>
    %46 = arith.maximumf %44, %45 : vector<8x128xf32>
    %c3_13 = arith.constant 3 : index
    %47 = memref.load %arg3[%c3_13] : memref<16xf32, #tpu.memory_space<smem>>
    %48 = vector.broadcast %47 : f32 to vector<8x128xf32>
    %49 = arith.mulf %46, %48 : vector<8x128xf32>
    %50 = arith.addf %38, %49 : vector<8x128xf32>
    %c4 = arith.constant 4 : index
    %51 = memref.load %arg1[%c4] : memref<16xf32, #tpu.memory_space<smem>>
    %52 = vector.broadcast %51 : f32 to vector<8x128xf32>
    %53 = arith.mulf %0, %52 : vector<8x128xf32>
    %c4_14 = arith.constant 4 : index
    %54 = memref.load %arg2[%c4_14] : memref<16xf32, #tpu.memory_space<smem>>
    %55 = vector.broadcast %54 : f32 to vector<8x128xf32>
    %56 = arith.addf %53, %55 : vector<8x128xf32>
    %cst_15 = arith.constant 0.000000e+00 : f32
    %57 = vector.broadcast %cst_15 : f32 to vector<8x128xf32>
    %58 = arith.maximumf %56, %57 : vector<8x128xf32>
    %c4_16 = arith.constant 4 : index
    %59 = memref.load %arg3[%c4_16] : memref<16xf32, #tpu.memory_space<smem>>
    %60 = vector.broadcast %59 : f32 to vector<8x128xf32>
    %61 = arith.mulf %58, %60 : vector<8x128xf32>
    %62 = arith.addf %50, %61 : vector<8x128xf32>
    %c5 = arith.constant 5 : index
    %63 = memref.load %arg1[%c5] : memref<16xf32, #tpu.memory_space<smem>>
    %64 = vector.broadcast %63 : f32 to vector<8x128xf32>
    %65 = arith.mulf %0, %64 : vector<8x128xf32>
    %c5_17 = arith.constant 5 : index
    %66 = memref.load %arg2[%c5_17] : memref<16xf32, #tpu.memory_space<smem>>
    %67 = vector.broadcast %66 : f32 to vector<8x128xf32>
    %68 = arith.addf %65, %67 : vector<8x128xf32>
    %cst_18 = arith.constant 0.000000e+00 : f32
    %69 = vector.broadcast %cst_18 : f32 to vector<8x128xf32>
    %70 = arith.maximumf %68, %69 : vector<8x128xf32>
    %c5_19 = arith.constant 5 : index
    %71 = memref.load %arg3[%c5_19] : memref<16xf32, #tpu.memory_space<smem>>
    %72 = vector.broadcast %71 : f32 to vector<8x128xf32>
    %73 = arith.mulf %70, %72 : vector<8x128xf32>
    %74 = arith.addf %62, %73 : vector<8x128xf32>
    %c6 = arith.constant 6 : index
    %75 = memref.load %arg1[%c6] : memref<16xf32, #tpu.memory_space<smem>>
    %76 = vector.broadcast %75 : f32 to vector<8x128xf32>
    %77 = arith.mulf %0, %76 : vector<8x128xf32>
    %c6_20 = arith.constant 6 : index
    %78 = memref.load %arg2[%c6_20] : memref<16xf32, #tpu.memory_space<smem>>
    %79 = vector.broadcast %78 : f32 to vector<8x128xf32>
    %80 = arith.addf %77, %79 : vector<8x128xf32>
    %cst_21 = arith.constant 0.000000e+00 : f32
    %81 = vector.broadcast %cst_21 : f32 to vector<8x128xf32>
    %82 = arith.maximumf %80, %81 : vector<8x128xf32>
    %c6_22 = arith.constant 6 : index
    %83 = memref.load %arg3[%c6_22] : memref<16xf32, #tpu.memory_space<smem>>
    %84 = vector.broadcast %83 : f32 to vector<8x128xf32>
    %85 = arith.mulf %82, %84 : vector<8x128xf32>
    %86 = arith.addf %74, %85 : vector<8x128xf32>
    %c7 = arith.constant 7 : index
    %87 = memref.load %arg1[%c7] : memref<16xf32, #tpu.memory_space<smem>>
    %88 = vector.broadcast %87 : f32 to vector<8x128xf32>
    %89 = arith.mulf %0, %88 : vector<8x128xf32>
    %c7_23 = arith.constant 7 : index
    %90 = memref.load %arg2[%c7_23] : memref<16xf32, #tpu.memory_space<smem>>
    %91 = vector.broadcast %90 : f32 to vector<8x128xf32>
    %92 = arith.addf %89, %91 : vector<8x128xf32>
    %cst_24 = arith.constant 0.000000e+00 : f32
    %93 = vector.broadcast %cst_24 : f32 to vector<8x128xf32>
    %94 = arith.maximumf %92, %93 : vector<8x128xf32>
    %c7_25 = arith.constant 7 : index
    %95 = memref.load %arg3[%c7_25] : memref<16xf32, #tpu.memory_space<smem>>
    %96 = vector.broadcast %95 : f32 to vector<8x128xf32>
    %97 = arith.mulf %94, %96 : vector<8x128xf32>
    %98 = arith.addf %86, %97 : vector<8x128xf32>
    %c8 = arith.constant 8 : index
    %99 = memref.load %arg1[%c8] : memref<16xf32, #tpu.memory_space<smem>>
    %100 = vector.broadcast %99 : f32 to vector<8x128xf32>
    %101 = arith.mulf %0, %100 : vector<8x128xf32>
    %c8_26 = arith.constant 8 : index
    %102 = memref.load %arg2[%c8_26] : memref<16xf32, #tpu.memory_space<smem>>
    %103 = vector.broadcast %102 : f32 to vector<8x128xf32>
    %104 = arith.addf %101, %103 : vector<8x128xf32>
    %cst_27 = arith.constant 0.000000e+00 : f32
    %105 = vector.broadcast %cst_27 : f32 to vector<8x128xf32>
    %106 = arith.maximumf %104, %105 : vector<8x128xf32>
    %c8_28 = arith.constant 8 : index
    %107 = memref.load %arg3[%c8_28] : memref<16xf32, #tpu.memory_space<smem>>
    %108 = vector.broadcast %107 : f32 to vector<8x128xf32>
    %109 = arith.mulf %106, %108 : vector<8x128xf32>
    %110 = arith.addf %98, %109 : vector<8x128xf32>
    %c9 = arith.constant 9 : index
    %111 = memref.load %arg1[%c9] : memref<16xf32, #tpu.memory_space<smem>>
    %112 = vector.broadcast %111 : f32 to vector<8x128xf32>
    %113 = arith.mulf %0, %112 : vector<8x128xf32>
    %c9_29 = arith.constant 9 : index
    %114 = memref.load %arg2[%c9_29] : memref<16xf32, #tpu.memory_space<smem>>
    %115 = vector.broadcast %114 : f32 to vector<8x128xf32>
    %116 = arith.addf %113, %115 : vector<8x128xf32>
    %cst_30 = arith.constant 0.000000e+00 : f32
    %117 = vector.broadcast %cst_30 : f32 to vector<8x128xf32>
    %118 = arith.maximumf %116, %117 : vector<8x128xf32>
    %c9_31 = arith.constant 9 : index
    %119 = memref.load %arg3[%c9_31] : memref<16xf32, #tpu.memory_space<smem>>
    %120 = vector.broadcast %119 : f32 to vector<8x128xf32>
    %121 = arith.mulf %118, %120 : vector<8x128xf32>
    %122 = arith.addf %110, %121 : vector<8x128xf32>
    %c10 = arith.constant 10 : index
    %123 = memref.load %arg1[%c10] : memref<16xf32, #tpu.memory_space<smem>>
    %124 = vector.broadcast %123 : f32 to vector<8x128xf32>
    %125 = arith.mulf %0, %124 : vector<8x128xf32>
    %c10_32 = arith.constant 10 : index
    %126 = memref.load %arg2[%c10_32] : memref<16xf32, #tpu.memory_space<smem>>
    %127 = vector.broadcast %126 : f32 to vector<8x128xf32>
    %128 = arith.addf %125, %127 : vector<8x128xf32>
    %cst_33 = arith.constant 0.000000e+00 : f32
    %129 = vector.broadcast %cst_33 : f32 to vector<8x128xf32>
    %130 = arith.maximumf %128, %129 : vector<8x128xf32>
    %c10_34 = arith.constant 10 : index
    %131 = memref.load %arg3[%c10_34] : memref<16xf32, #tpu.memory_space<smem>>
    %132 = vector.broadcast %131 : f32 to vector<8x128xf32>
    %133 = arith.mulf %130, %132 : vector<8x128xf32>
    %134 = arith.addf %122, %133 : vector<8x128xf32>
    %c11 = arith.constant 11 : index
    %135 = memref.load %arg1[%c11] : memref<16xf32, #tpu.memory_space<smem>>
    %136 = vector.broadcast %135 : f32 to vector<8x128xf32>
    %137 = arith.mulf %0, %136 : vector<8x128xf32>
    %c11_35 = arith.constant 11 : index
    %138 = memref.load %arg2[%c11_35] : memref<16xf32, #tpu.memory_space<smem>>
    %139 = vector.broadcast %138 : f32 to vector<8x128xf32>
    %140 = arith.addf %137, %139 : vector<8x128xf32>
    %cst_36 = arith.constant 0.000000e+00 : f32
    %141 = vector.broadcast %cst_36 : f32 to vector<8x128xf32>
    %142 = arith.maximumf %140, %141 : vector<8x128xf32>
    %c11_37 = arith.constant 11 : index
    %143 = memref.load %arg3[%c11_37] : memref<16xf32, #tpu.memory_space<smem>>
    %144 = vector.broadcast %143 : f32 to vector<8x128xf32>
    %145 = arith.mulf %142, %144 : vector<8x128xf32>
    %146 = arith.addf %134, %145 : vector<8x128xf32>
    %c12 = arith.constant 12 : index
    %147 = memref.load %arg1[%c12] : memref<16xf32, #tpu.memory_space<smem>>
    %148 = vector.broadcast %147 : f32 to vector<8x128xf32>
    %149 = arith.mulf %0, %148 : vector<8x128xf32>
    %c12_38 = arith.constant 12 : index
    %150 = memref.load %arg2[%c12_38] : memref<16xf32, #tpu.memory_space<smem>>
    %151 = vector.broadcast %150 : f32 to vector<8x128xf32>
    %152 = arith.addf %149, %151 : vector<8x128xf32>
    %cst_39 = arith.constant 0.000000e+00 : f32
    %153 = vector.broadcast %cst_39 : f32 to vector<8x128xf32>
    %154 = arith.maximumf %152, %153 : vector<8x128xf32>
    %c12_40 = arith.constant 12 : index
    %155 = memref.load %arg3[%c12_40] : memref<16xf32, #tpu.memory_space<smem>>
    %156 = vector.broadcast %155 : f32 to vector<8x128xf32>
    %157 = arith.mulf %154, %156 : vector<8x128xf32>
    %158 = arith.addf %146, %157 : vector<8x128xf32>
    %c13 = arith.constant 13 : index
    %159 = memref.load %arg1[%c13] : memref<16xf32, #tpu.memory_space<smem>>
    %160 = vector.broadcast %159 : f32 to vector<8x128xf32>
    %161 = arith.mulf %0, %160 : vector<8x128xf32>
    %c13_41 = arith.constant 13 : index
    %162 = memref.load %arg2[%c13_41] : memref<16xf32, #tpu.memory_space<smem>>
    %163 = vector.broadcast %162 : f32 to vector<8x128xf32>
    %164 = arith.addf %161, %163 : vector<8x128xf32>
    %cst_42 = arith.constant 0.000000e+00 : f32
    %165 = vector.broadcast %cst_42 : f32 to vector<8x128xf32>
    %166 = arith.maximumf %164, %165 : vector<8x128xf32>
    %c13_43 = arith.constant 13 : index
    %167 = memref.load %arg3[%c13_43] : memref<16xf32, #tpu.memory_space<smem>>
    %168 = vector.broadcast %167 : f32 to vector<8x128xf32>
    %169 = arith.mulf %166, %168 : vector<8x128xf32>
    %170 = arith.addf %158, %169 : vector<8x128xf32>
    %c14 = arith.constant 14 : index
    %171 = memref.load %arg1[%c14] : memref<16xf32, #tpu.memory_space<smem>>
    %172 = vector.broadcast %171 : f32 to vector<8x128xf32>
    %173 = arith.mulf %0, %172 : vector<8x128xf32>
    %c14_44 = arith.constant 14 : index
    %174 = memref.load %arg2[%c14_44] : memref<16xf32, #tpu.memory_space<smem>>
    %175 = vector.broadcast %174 : f32 to vector<8x128xf32>
    %176 = arith.addf %173, %175 : vector<8x128xf32>
    %cst_45 = arith.constant 0.000000e+00 : f32
    %177 = vector.broadcast %cst_45 : f32 to vector<8x128xf32>
    %178 = arith.maximumf %176, %177 : vector<8x128xf32>
    %c14_46 = arith.constant 14 : index
    %179 = memref.load %arg3[%c14_46] : memref<16xf32, #tpu.memory_space<smem>>
    %180 = vector.broadcast %179 : f32 to vector<8x128xf32>
    %181 = arith.mulf %178, %180 : vector<8x128xf32>
    %182 = arith.addf %170, %181 : vector<8x128xf32>
    %c15 = arith.constant 15 : index
    %183 = memref.load %arg1[%c15] : memref<16xf32, #tpu.memory_space<smem>>
    %184 = vector.broadcast %183 : f32 to vector<8x128xf32>
    %185 = arith.mulf %0, %184 : vector<8x128xf32>
    %c15_47 = arith.constant 15 : index
    %186 = memref.load %arg2[%c15_47] : memref<16xf32, #tpu.memory_space<smem>>
    %187 = vector.broadcast %186 : f32 to vector<8x128xf32>
    %188 = arith.addf %185, %187 : vector<8x128xf32>
    %cst_48 = arith.constant 0.000000e+00 : f32
    %189 = vector.broadcast %cst_48 : f32 to vector<8x128xf32>
    %190 = arith.maximumf %188, %189 : vector<8x128xf32>
    %c15_49 = arith.constant 15 : index
    %191 = memref.load %arg3[%c15_49] : memref<16xf32, #tpu.memory_space<smem>>
    %192 = vector.broadcast %191 : f32 to vector<8x128xf32>
    %193 = arith.mulf %190, %192 : vector<8x128xf32>
    %194 = arith.addf %182, %193 : vector<8x128xf32>
    %c0_50 = arith.constant 0 : index
    %c0_51 = arith.constant 0 : index
    %195 = vector.load %arg6[%c0_50, %c0_51] : memref<8x128xf32, #tpu.memory_space<vmem>>, vector<8x128xf32>
    tpu.vector_store %arg6[%c0_50, %c0_51], %194 {strides = array<i32>} : memref<8x128xf32, #tpu.memory_space<vmem>>, vector<8x128xf32>,
    return
  }
  func.func @transform_0(%arg0: i32) -> i32 {
    %c0_i32 = arith.constant 0 : i32
    %c0_i32_0 = arith.constant 0 : i32
    return %c0_i32 : i32
  }
  func.func @transform_1(%arg0: i32) -> i32 {
    %c0_i32 = arith.constant 0 : i32
    %c0_i32_0 = arith.constant 0 : i32
    return %c0_i32 : i32
  }
  func.func @transform_2(%arg0: i32) -> i32 {
    %c0_i32 = arith.constant 0 : i32
    %c0_i32_0 = arith.constant 0 : i32
    return %c0_i32 : i32
  }
  func.func @transform_3(%arg0: i32) -> i32 {
    %c0_i32 = arith.constant 0 : i32
    %c0_i32_0 = arith.constant 0 : i32
    return %c0_i32 : i32
  }
  func.func @transform_4(%arg0: i32) -> (i32, i32) {
    %c0_i32 = arith.constant 0 : i32
    %c0_i32_0 = arith.constant 0 : i32
    return %arg0, %c0_i32 : i32, i32
  }
  func.func @transform_5(%arg0: i32) -> (i32, i32) {
    %c0_i32 = arith.constant 0 : i32
    %c0_i32_0 = arith.constant 0 : i32
    return %arg0, %c0_i32 : i32, i32
  }
}

</mosaic_0001>

<bundles_post_ra>
// kernel: tpu_custom_call.1
= control target key start
LH: loop header
LB: loop body
LE: loop exit
PB: predicated region body
PF: predicated region fallthrough
CT: control target
= control target key end

     0   :  { %11 = vsyncpa [#allocation6], 0  ;;  %s523_s0 = inlined_call_operand.vmem [shape: f32[16], index: 0, kind: input, shape index: {}]   ;;  %s524_s1 = inlined_call_operand.vmem [shape: f32[16], index: 1, kind: input, shape index: {}]   ;;  %s525_s2 = inlined_call_operand.vmem [shape: f32[16], index: 2, kind: input, shape index: {}]   ;;  %s526_s3 = inlined_call_operand.<no memory space> [shape: f32[1], index: 3, kind: input, shape index: {}]   ;;  %s527_s4 = inlined_call_operand.hbm [shape: f32[8,128], index: 4, kind: input, shape index: {}]   ;;  %s528_s5 = inlined_call_operand.hbm [shape: f32[8,128], index: 5, kind: output, shape index: {}]  }
   0x1   :  { %12 = vsyncpa [#allocation8], 0 }
   0x2   :  { %13 = vsyncpa [#allocation4], 0  ;;  %s29_s20 = sshll.u32 %s524_s1, 4  ;;  %s30_s20 = int_to_ptr.vmem [resolvable:$true] %s29_s20 }
   0x3   :  { %14 = vsyncpa [#allocation5], 0  ;;  %s20_s23 = sshll.u32 %s523_s0, 4  ;;  %s413_s24 = smov [#allocation7]   ;;  %s21_s23 = int_to_ptr.vmem [resolvable:$true] %s20_s23 }
   0x4   :  { %32 = dma.vmem_to_smem %s30_s20, 16, %s413_s24, [#allocation8]  }
   0x5   :  { %s414_s25 = smov [#allocation3]   ;;  %s38_s28 = sshll.u32 %s525_s2, 4  ;;  %s39_s28 = int_to_ptr.vmem [resolvable:$true] %s38_s28 }
   0x6   :  { %23 = dma.vmem_to_smem %s21_s23, 16, %s414_s25, [#allocation6]  }
   0x7   :  { %s49_s1 = sshll.u32 %s527_s4, 4  ;;  %s415_s6 = smov [#allocation9]   ;;  %s50_s1 = int_to_ptr.hbm [resolvable:$true] %s49_s1 }
   0x8   :  { %41 = dma.vmem_to_smem %s39_s28, 16, %s415_s6, [#allocation8]  }
   0x9   :  { %s416_s7 = smov [#allocation10]  }
   0xa   :  { %s51_s8 = sshll.u32 %s416_s7, 4  ;;  %s52_s8 = int_to_ptr.vmem [resolvable:$true] %s51_s8 }
   0xb   :  { %54 = dma.hbm_to_vmem [thread:$0]  %s50_s1, 128, %s52_s8, [#allocation4]  }
   0xc   :  { %405 = dma.done.wait [#allocation6], 16  }
   0xd   :  { %406 = vsyncadd [#allocation6], 4294967280 }
   0xe   :  { %407 = dma.done.wait [#allocation8], 32  }
   0xf   :  { %408 = vsyncadd [#allocation8], 4294967264 }
  0x10   :  { %409 = dma.done.wait [#allocation4], 128  }
  0x11   :  { %410 = vsyncadd [#allocation4], 4294967168 }
  0x12   :  { %71 = sfence }
  0x13   :  { %s75_s0 = sld [smem:[#allocation3]]  ;;  %v460_v0 = vld [vmem:[#allocation10] sm:$0xff]  ;;  %v74_v10 = vstv %s526_s3 }
  0x14   :  { %s78_s2 = sld [smem:[#allocation7]] }
  0x15   :  { %s82_s9 = sld [smem:[#allocation9]] }
  0x16   :  { %s271_s10 = sld [smem:[#allocation3 + $0x1]] }
  0x17   :  { %s272_s4 = sld [smem:[#allocation7 + $0x1]] }
  0x18   :  { %s462_s11 = sld [smem:[#allocation9 + $0x1]] }
  0x19   :  { %v76_v1 = vstv %s75_s0  ;;  %s274_s12 = sld [smem:[#allocation3 + $0x2]] }
  0x1a   :  { %v77_v2 = vmul.f32 %v76_v1, %v460_v0  ;;  %v79_v3 = vstv %s78_s2  ;;  %s275_s13 = sld [smem:[#allocation7 + $0x2]] }
  0x1b   :  { %s465_s14 = sld [smem:[#allocation9 + $0x2]]  ;;  %v83_v6 = vstv %s82_s9 }
  0x1c   :  { %v80_v4 = vadd.f32 %v79_v3, %v77_v2  ;;  %v87_v5 = vstv %s271_s10  ;;  %s277_s15 = sld [smem:[#allocation3 + $0x3]] }
  0x1d   :  { %v88_v7 = vmul.f32 %v87_v5, %v460_v0  ;;  %v90_v8 = vstv %s272_s4  ;;  %s278_s16 = sld [smem:[#allocation7 + $0x3]] }
  0x1e   :  { %v81_v9 = vmax.f32 %v80_v4, 0.0  ;;  %s468_s17 = sld [smem:[#allocation9 + $0x3]]  ;;  %v94_v14 = vstv %s462_s11 }
  0x1f   :  { %v91_v11 = vadd.f32 %v90_v8, %v88_v7  ;;  %v98_v12 = vstv %s274_s12  ;;  %s280_s20 = sld [smem:[#allocation3 + $0x4]] }
  0x20   :  { %v84_v13 = vmul.f32 %v83_v6, %v81_v9  ;;  %v99_v15 = vmul.f32 %v98_v12, %v460_v0  ;;  %v101_v16 = vstv %s275_s13  ;;  %s281_s21 = sld [smem:[#allocation7 + $0x4]] }
  0x21   :  { %v92_v17 = vmax.f32 %v91_v11, 0.0  ;;  %s475_s22 = sld [smem:[#allocation9 + $0x4]]  ;;  %v105_v22 = vstv %s465_s14 }
  0x22   :  { %v85_v18 = vadd.f32 %v84_v13, %v74_v10  ;;  %v102_v19 = vadd.f32 %v101_v16, %v99_v15  ;;  %v109_v20 = vstv %s277_s15  ;;  %s283_s23 = sld [smem:[#allocation3 + $0x5]] }
  0x23   :  { %v95_v21 = vmul.f32 %v94_v14, %v92_v17  ;;  %v110_v23 = vmul.f32 %v109_v20, %v460_v0  ;;  %v112_v24 = vstv %s278_s16  ;;  %s284_s3 = sld [smem:[#allocation7 + $0x5]] }
  0x24   :  { %v103_v25 = vmax.f32 %v102_v19, 0.0  ;;  %s479_s24 = sld [smem:[#allocation9 + $0x5]]  ;;  %v116_v30 = vstv %s468_s17 }
  0x25   :  { %v96_v26 = vadd.f32 %v95_v21, %v85_v18  ;;  %v113_v27 = vadd.f32 %v112_v24, %v110_v23  ;;  %v120_v28 = vstv %s280_s20  ;;  %s286_s25 = sld [smem:[#allocation3 + $0x6]] }
  0x26   :  { %v106_v29 = vmul.f32 %v105_v22, %v103_v25  ;;  %v121_v31 = vmul.f32 %v120_v28, %v460_v0  ;;  %v123_v32 = vstv %s281_s21  ;;  %s287_s26 = sld [smem:[#allocation7 + $0x6]] }
  0x27   :  { %v114_v33 = vmax.f32 %v113_v27, 0.0  ;;  %s483_s27 = sld [smem:[#allocation9 + $0x6]]  ;;  %v127_v38 = vstv %s475_s22 }
  0x28   :  { %v107_v34 = vadd.f32 %v106_v29, %v96_v26  ;;  %v124_v35 = vadd.f32 %v123_v32, %v121_v31  ;;  %v131_v36 = vstv %s283_s23  ;;  %s289_s28 = sld [smem:[#allocation3 + $0x7]] }
  0x29   :  { %v117_v37 = vmul.f32 %v116_v30, %v114_v33  ;;  %v132_v39 = vmul.f32 %v131_v36, %v460_v0  ;;  %v134_v40 = vstv %s284_s3  ;;  %s290_s29 = sld [smem:[#allocation7 + $0x7]] }
  0x2a   :  { %v125_v41 = vmax.f32 %v124_v35, 0.0  ;;  %s487_s30 = sld [smem:[#allocation9 + $0x7]]  ;;  %v138_v46 = vstv %s479_s24 }
  0x2b   :  { %v118_v42 = vadd.f32 %v117_v37, %v107_v34  ;;  %v135_v43 = vadd.f32 %v134_v40, %v132_v39  ;;  %v142_v44 = vstv %s286_s25  ;;  %s292_s1 = sld [smem:[#allocation3 + $0x8]]  ;;  %s417_s25 = smov [#allocation11]  }
  0x2c   :  { %v128_v45 = vmul.f32 %v127_v38, %v125_v41  ;;  %v143_v47 = vmul.f32 %v142_v44, %v460_v0  ;;  %v145_v48 = vstv %s287_s26  ;;  %s293_s6 = sld [smem:[#allocation7 + $0x8]]  ;;  %s257_s26 = sshll.u32 %s417_s25, 4  ;;  %s258_s26 = int_to_ptr.vmem [resolvable:$true] %s257_s26 }
  0x2d   :  { %v136_v49 = vmax.f32 %v135_v43, 0.0  ;;  %s491_s7 = sld [smem:[#allocation9 + $0x8]]  ;;  %v149_v54 = vstv %s483_s27 }
  0x2e   :  { %v129_v50 = vadd.f32 %v128_v45, %v118_v42  ;;  %v146_v51 = vadd.f32 %v145_v48, %v143_v47  ;;  %v153_v52 = vstv %s289_s28  ;;  %s295_s8 = sld [smem:[#allocation3 + $0x9]] }
  0x2f   :  { %v139_v53 = vmul.f32 %v138_v46, %v136_v49  ;;  %v154_v55 = vmul.f32 %v153_v52, %v460_v0  ;;  %v156_v56 = vstv %s290_s29  ;;  %s296_s0 = sld [smem:[#allocation7 + $0x9]]  ;;  %s259_s29 = sshll.u32 %s528_s5, 4  ;;  %s260_s29 = int_to_ptr.hbm [resolvable:$true] %s259_s29 }
  0x30   :  { %v147_v57 = vmax.f32 %v146_v51, 0.0  ;;  %s495_s2 = sld [smem:[#allocation9 + $0x9]]  ;;  %v160_v62 = vstv %s487_s30 }
  0x31   :  { %v140_v58 = vadd.f32 %v139_v53, %v129_v50  ;;  %v157_v59 = vadd.f32 %v156_v56, %v154_v55  ;;  %v164_v60 = vstv %s292_s1  ;;  %s298_s9 = sld [smem:[#allocation3 + $0xa]] }
  0x32   :  { %v150_v61 = vmul.f32 %v149_v54, %v147_v57  ;;  %v165_v63 = vmul.f32 %v164_v60, %v460_v0  ;;  %v167_v1 = vstv %s293_s6  ;;  %s299_s10 = sld [smem:[#allocation7 + $0xa]] }
  0x33   :  { %v158_v2 = vmax.f32 %v157_v59, 0.0  ;;  %s499_s4 = sld [smem:[#allocation9 + $0xa]]  ;;  %v171_v7 = vstv %s491_s7 }
  0x34   :  { %v151_v3 = vadd.f32 %v150_v61, %v140_v58  ;;  %v168_v4 = vadd.f32 %v167_v1, %v165_v63  ;;  %v175_v5 = vstv %s295_s8  ;;  %s301_s11 = sld [smem:[#allocation3 + $0xb]] }
  0x35   :  { %v161_v6 = vmul.f32 %v160_v62, %v158_v2  ;;  %v176_v8 = vmul.f32 %v175_v5, %v460_v0  ;;  %v178_v9 = vstv %s296_s0  ;;  %s302_s12 = sld [smem:[#allocation7 + $0xb]] }
  0x36   :  { %v169_v10 = vmax.f32 %v168_v4, 0.0  ;;  %s503_s13 = sld [smem:[#allocation9 + $0xb]]  ;;  %v182_v15 = vstv %s495_s2 }
  0x37   :  { %v162_v11 = vadd.f32 %v161_v6, %v151_v3  ;;  %v179_v12 = vadd.f32 %v178_v9, %v176_v8  ;;  %v186_v13 = vstv %s298_s9  ;;  %s304_s14 = sld [smem:[#allocation3 + $0xc]] }
  0x38   :  { %v172_v14 = vmul.f32 %v171_v7, %v169_v10  ;;  %v187_v16 = vmul.f32 %v186_v13, %v460_v0  ;;  %v189_v17 = vstv %s299_s10  ;;  %s305_s15 = sld [smem:[#allocation7 + $0xc]] }
  0x39   :  { %v180_v18 = vmax.f32 %v179_v12, 0.0  ;;  %s507_s16 = sld [smem:[#allocation9 + $0xc]]  ;;  %v193_v23 = vstv %s499_s4 }
  0x3a   :  { %v173_v19 = vadd.f32 %v172_v14, %v162_v11  ;;  %v190_v20 = vadd.f32 %v189_v17, %v187_v16  ;;  %v197_v21 = vstv %s301_s11  ;;  %s307_s17 = sld [smem:[#allocation3 + $0xd]] }
  0x3b   :  { %v183_v22 = vmul.f32 %v182_v15, %v180_v18  ;;  %v198_v24 = vmul.f32 %v197_v21, %v460_v0  ;;  %v200_v25 = vstv %s302_s12  ;;  %s308_s18 = sld [smem:[#allocation7 + $0xd]] }
  0x3c   :  { %v191_v26 = vmax.f32 %v190_v20, 0.0  ;;  %s511_s19 = sld [smem:[#allocation9 + $0xd]]  ;;  %v204_v31 = vstv %s503_s13 }
  0x3d   :  { %v184_v27 = vadd.f32 %v183_v22, %v173_v19  ;;  %v201_v28 = vadd.f32 %v200_v25, %v198_v24  ;;  %v208_v29 = vstv %s304_s14  ;;  %s310_s20 = sld [smem:[#allocation3 + $0xe]] }
  0x3e   :  { %v194_v30 = vmul.f32 %v193_v23, %v191_v26  ;;  %v209_v32 = vmul.f32 %v208_v29, %v460_v0  ;;  %v211_v33 = vstv %s305_s15  ;;  %s311_s21 = sld [smem:[#allocation7 + $0xe]] }
  0x3f   :  { %v202_v34 = vmax.f32 %v201_v28, 0.0  ;;  %s312_s22 = sld [smem:[#allocation9 + $0xe]]  ;;  %v215_v39 = vstv %s507_s16 }
  0x40   :  { %v195_v35 = vadd.f32 %v194_v30, %v184_v27  ;;  %v212_v36 = vadd.f32 %v211_v33, %v209_v32  ;;  %v219_v37 = vstv %s307_s17  ;;  %s313_s23 = sld [smem:[#allocation3 + $0xf]] }
  0x41   :  { %v205_v38 = vmul.f32 %v204_v31, %v202_v34  ;;  %v220_v40 = vmul.f32 %v219_v37, %v460_v0  ;;  %v222_v41 = vstv %s308_s18  ;;  %s314_s3 = sld [smem:[#allocation7 + $0xf]] }
  0x42   :  { %v213_v42 = vmax.f32 %v212_v36, 0.0  ;;  %s315_s24 = sld [smem:[#allocation9 + $0xf]]  ;;  %v226_v47 = vstv %s511_s19 }
  0x43   :  { %v206_v43 = vadd.f32 %v205_v38, %v195_v35  ;;  %v223_v44 = vadd.f32 %v222_v41, %v220_v40  ;;  %v230_v45 = vstv %s310_s20 }
  0x44   :  { %v216_v46 = vmul.f32 %v215_v39, %v213_v42  ;;  %v231_v48 = vmul.f32 %v230_v45, %v460_v0  ;;  %v233_v49 = vstv %s311_s21 }
  0x45   :  { %v224_v50 = vmax.f32 %v223_v44, 0.0  ;;  %v237_v55 = vstv %s312_s22 }
  0x46   :  { %v217_v51 = vadd.f32 %v216_v46, %v206_v43  ;;  %v234_v52 = vadd.f32 %v233_v49, %v231_v48  ;;  %v241_v53 = vstv %s313_s23 }
  0x47   :  { %v227_v54 = vmul.f32 %v226_v47, %v224_v50  ;;  %v242_v56 = vmul.f32 %v241_v53, %v460_v0  ;;  %v244_v57 = vstv %s314_s3 }
  0x48   :  { %v235_v58 = vmax.f32 %v234_v52, 0.0  ;;  %v248_v62 = vstv %s315_s24 }
  0x49   :  { %v228_v59 = vadd.f32 %v227_v54, %v217_v51  ;;  %v245_v60 = vadd.f32 %v244_v57, %v242_v56 }
  0x4a   :  { %v238_v61 = vmul.f32 %v237_v55, %v235_v58 }
  0x4b   :  { %v246_v63 = vmax.f32 %v245_v60, 0.0 }
  0x4c   :  { %v239_v1 = vadd.f32 %v238_v61, %v228_v59 }
  0x4d   :  { %v249_v2 = vmul.f32 %v248_v62, %v246_v63 }
  0x4f   :  { %v250_v3 = vadd.f32 %v249_v2, %v239_v1 }
  0x51   :  { %251 = vst [vmem:[#allocation11] sm:$0xff] %v250_v3 }
  0x52   :  { %262 = dma.vmem_to_hbm [thread:$0]  %s258_s26, 128, %s260_s29, [#allocation5]  }
  0x53   :  { %411 = dma.done.wait [#allocation5], 128  }
  0x54   :  { %412 = vsyncadd [#allocation5], 4294967168 }
  0x55   :  { %267 = vsyncpa [#allocation4], 1 }
  0x56   :  { %268 = vsyncpa [#allocation5], 1 }
  0x57   :  { %269 = vsyncpa [#allocation6], 1 }
  0x58   :  { %270 = vsyncpa [#allocation8], 1 }

</bundles_post_ra>
